<compile_context>
chip_gen: v7x
topology: tpu7x:2x2x1
jax: 0.10.0
libtpu: 0.0.40
codegen_flags: <defaults>
</compile_context>

<pallas_src>
import math

import jax
import jax.numpy as jnp
from jax.experimental import pallas as pl
from jax.experimental.pallas import tpu as pltpu

_LANE_BLOCK = 128


def _round_up(n, m):
    return ((n + m - 1) // m) * m


def _make_fused_kernel(layer_meta):
    """Fused kernel body.

    Refs: x (Cin0*L0, B), a_pack (R, W), b_pack (R, 1), out (CoutN*LoN, B).
    layer_meta: static tuple of (row_start, rows, cols) per layer; the
    (rows, cols) block of a_pack starting at row_start is that layer's dense
    (weights + zero-padding + stride) matrix.
    """

    def kernel(x_ref, a_ref, b_ref, o_ref):
        h = x_ref[...]                                   # (Cin0*L0, B) f32
        for r0, rows, cols in layer_meta:                # static unroll
            a = a_ref[r0:r0 + rows, 0:cols]              # static aligned slice
            h = jnp.dot(a, h, preferred_element_type=jnp.float32)
            h = h + b_ref[r0:r0 + rows, :]               # lane-broadcast bias
        o_ref[...] = h

    return kernel


class StreamableModelPallas:
    """First-call forward of StreamableModel with fresh (zeroed) stream state.

    Accepts a batch of B independent streams laid out along the TPU lane
    axis; B == 1 matches the torch module exactly, B > 1 applies the same
    first-call semantics to each stream.
    """

    def __init__(self, buffer_length, layer_params):
        # layer_params: list of {"weight": (Cout,Cin,K), "bias": (Cout,), "stride": int}
        self.num_layers = len(layer_params)
        self.input_length = buffer_length
        self.in_channels = int(layer_params[0]["weight"].shape[1])
        self.out_channels = int(layer_params[-1]["weight"].shape[0])

        L = buffer_length
        bad_input_length = 0
        bad_output_length = 0
        layer_meta = []
        a_blocks, b_blocks = [], []
        row_start = 0
        prev_rows = self.in_channels * L
        for lp in layer_params:
            w = jnp.asarray(lp["weight"], jnp.float32)       # (Cout, Cin, K)
            b = jnp.asarray(lp["bias"], jnp.float32)         # (Cout,)
            s = int(lp["stride"])
            cout, cin, K = (int(d) for d in w.shape)
            pad = K // 2

            # --- static first-call bookkeeping (mirrors StreamableConv1D) ---
            # fresh state: prev_length == padding, new_input_length == L.
            full_length = pad + L + pad
            good_length = full_length - bad_input_length - pad
            # TODO(synk): full_length < kernel_size early-return-None branch of
            # the reference is not modeled (never taken for these static shapes).
            Lo = (full_length - K) // s + 1
            good_output_length = max(0, int((good_length - K) / s + 1))
            bad_output_length = Lo - good_output_length
            bad_input_length = bad_output_length

            # --- fold zero padding + stride + weights into one dense matrix ---
            rows, cols = cout * Lo, cin * L
            assert cols == prev_rows, "layer channel/length chain mismatch"
            to = jnp.arange(Lo)
            ti = jnp.arange(L)
            k_idx = ti[None, :] - to[:, None] * s + pad       # (Lo, L)
            valid = (k_idx >= 0) & (k_idx < K)
            k_safe = jnp.clip(k_idx, 0, K - 1)
            taps = w[:, :, k_safe] * valid[None, None].astype(jnp.float32)
            # (Cout, Cin, Lo, L) -> (Cout, Lo, Cin, L) -> (Cout*Lo, Cin*L)
            a_blocks.append(jnp.transpose(taps, (0, 2, 1, 3)).reshape(rows, cols))
            b_blocks.append(jnp.repeat(b, Lo).reshape(rows, 1))

            layer_meta.append((row_start, rows, cols))
            row_start += _round_up(rows, 8)     # keep row blocks sublane-aligned
            prev_rows = rows
            L = Lo

        self.output_length = L
        self.bad_output_length = bad_output_length
        in_rows = self.in_channels * self.input_length
        out_rows = self.out_channels * self.output_length

        # Pack every layer's matrix / bias into two flat operands.
        total_rows = _round_up(row_start, 8)
        width = _round_up(max(c for _, _, c in layer_meta), _LANE_BLOCK)
        a_pack = jnp.zeros((total_rows, width), jnp.float32)
        b_pack = jnp.zeros((total_rows, 1), jnp.float32)
        for (r0, rows, cols), a_blk, b_blk in zip(layer_meta, a_blocks, b_blocks):
            a_pack = a_pack.at[r0:r0 + rows, 0:cols].set(a_blk)
            b_pack = b_pack.at[r0:r0 + rows, :].set(b_blk)

        kernel = _make_fused_kernel(tuple(layer_meta))

        def fused_forward(x):                               # x: (B, Cin, L)
            B = x.shape[0]
            # Flatten (B, Cin, L) -> (Cin*L, B): layout plumbing inside the jit.
            x_flat = x.astype(jnp.float32).reshape(B, in_rows).T
            if B <= _LANE_BLOCK:
                out_flat = pl.pallas_call(
                    kernel,
                    out_shape=jax.ShapeDtypeStruct((out_rows, B), jnp.float32),
                    in_specs=[pl.BlockSpec(memory_space=pltpu.MemorySpace.VMEM)] * 3,
                    out_specs=pl.BlockSpec(memory_space=pltpu.MemorySpace.VMEM),
                )(x_flat, a_pack, b_pack)
            else:
                # Lane-tile the stream batch; "parallel" lets v7x shard it
                # across both TensorCores.  Params map to block (0,0) for every
                # grid step, so they stay VMEM-resident (no re-DMA).
                Bp = _round_up(B, _LANE_BLOCK)
                x_pad = jnp.pad(x_flat, ((0, 0), (0, Bp - B)))
                out_flat = pl.pallas_call(
                    kernel,
                    out_shape=jax.ShapeDtypeStruct((out_rows, Bp), jnp.float32),
                    grid=(Bp // _LANE_BLOCK,),
                    in_specs=[
                        pl.BlockSpec((in_rows, _LANE_BLOCK), lambda i: (0, i)),
                        pl.BlockSpec(a_pack.shape, lambda i: (0, 0)),
                        pl.BlockSpec(b_pack.shape, lambda i: (0, 0)),
                    ],
                    out_specs=pl.BlockSpec((out_rows, _LANE_BLOCK),
                                           lambda i: (0, i)),
                    compiler_params=pltpu.CompilerParams(
                        dimension_semantics=("parallel",)),
                )(x_pad, a_pack, b_pack)
                out_flat = out_flat[:, :B]
            # (CoutN*LoN, B) -> (B, CoutN, LoN), still inside the single jit.
            return out_flat.T.reshape(B, self.out_channels, self.output_length)

        self._forward = jax.jit(fused_forward)

    def forward(self, buffer):
        # buffer: (B, Cin, L).  B == 1 reproduces the torch module exactly;
        # B > 1 runs B independent fresh-state streams.
        return self._forward(buffer), self.bad_output_length


if __name__ == "__main__":
    key = jax.random.PRNGKey(0)

    buffer_length = 32
    batch = 2            # independent streams, batched along the lane axis
    # Conv1d stack: (in_channels, out_channels, kernel_size, stride).
    # Time lengths 32 -> 16 -> 8 -> 8; flattened layer sizes 256 -> 128 -> 128 -> 64.
    cfg = [(8, 8, 5, 2), (8, 16, 3, 2), (16, 8, 3, 1)]

    # Deterministic parameter init (PyTorch Conv1d default uniform range).
    layer_params = []
    for cin, cout, K, s in cfg:
        key, kw, kb = jax.random.split(key, 3)
        bound = 1.0 / math.sqrt(cin * K)
        w = jax.random.uniform(kw, (cout, cin, K), jnp.float32, -bound, bound)
        b = jax.random.uniform(kb, (cout,), jnp.float32, -bound, bound)
        layer_params.append({"weight": w, "bias": b, "stride": s})

    model = StreamableModelPallas(buffer_length, layer_params)

    key, kx = jax.random.split(key)
    x = jax.random.normal(kx, (batch, cfg[0][0], buffer_length), jnp.float32)

    out, bad_output_length = model.forward(x)
    out = jax.block_until_ready(out)

    # Reference: plain-XLA conv chain (first call == zero padding K//2 per side).
    ref = x
    for lp in layer_params:
        w, b, s = lp["weight"], lp["bias"], lp["stride"]
        pad = w.shape[2] // 2
        ref = jax.lax.conv_general_dilated(
            ref, w, window_strides=(s,), padding=[(pad, pad)],
            dimension_numbers=("NCH", "OIH", "NCH")) + b[None, :, None]

    # Shape / bookkeeping sanity: 32 -> 16 -> 8 -> 8 time steps, 8 out channels,
    # bad_output_length chain: 0 -> 1 -> 1 -> 2.
    assert out.shape == (batch, 8, 8), out.shape
    assert bad_output_length == 2, bad_output_length
    assert jnp.allclose(out, ref, atol=1e-3, rtol=1e-3), float(
        jnp.max(jnp.abs(out - ref)))

    print("KERNEL_OK")
</pallas_src>

<mosaic_0001>
module attributes {stable_mosaic.version = 11 : i64} {
  func.func @kernel(%arg0: memref<256x2xf32, #tpu.memory_space<vmem>>, %arg1: memref<320x256xf32, #tpu.memory_space<vmem>>, %arg2: memref<320x1xf32, #tpu.memory_space<vmem>>, %arg3: memref<64x2xf32, #tpu.memory_space<vmem>>) attributes {dimension_semantics = [], scalar_prefetch = 0 : i64, scratch_operands = 0 : i64, tpu.core_type = #tpu.core_type<tc>} {
    %c0 = arith.constant 0 : index
    %c0_0 = arith.constant 0 : index
    %0 = vector.load %arg0[%c0, %c0_0] : memref<256x2xf32, #tpu.memory_space<vmem>>, vector<256x2xf32>
    %c0_1 = arith.constant 0 : index
    %c0_2 = arith.constant 0 : index
    %1 = vector.load %arg1[%c0_1, %c0_2] : memref<320x256xf32, #tpu.memory_space<vmem>>, vector<128x256xf32>
    %cst = arith.constant dense<0.000000e+00> : vector<128x2xf32>
    %2 = tpu.matmul %1, %0, %cst {dimension_numbers = #tpu.dot_dimension_numbers<[1], [0], [0], [1], [0, 0, 1, 1], [], []>} : vector<128x256xf32>, vector<256x2xf32>, vector<128x2xf32> -> vector<128x2xf32>
    %c0_3 = arith.constant 0 : index
    %c0_4 = arith.constant 0 : index
    %3 = vector.load %arg2[%c0_3, %c0_4] : memref<320x1xf32, #tpu.memory_space<vmem>>, vector<128x1xf32>
    %4 = vector.broadcast %3 : vector<128x1xf32> to vector<128x2xf32>
    %5 = arith.addf %2, %4 : vector<128x2xf32>
    %c128 = arith.constant 128 : index
    %c0_5 = arith.constant 0 : index
    %6 = vector.load %arg1[%c128, %c0_5] : memref<320x256xf32, #tpu.memory_space<vmem>>, vector<128x128xf32>
    %cst_6 = arith.constant dense<0.000000e+00> : vector<128x2xf32>
    %7 = tpu.matmul %6, %5, %cst_6 {dimension_numbers = #tpu.dot_dimension_numbers<[1], [0], [0], [1], [0, 0, 1, 1], [], []>} : vector<128x128xf32>, vector<128x2xf32>, vector<128x2xf32> -> vector<128x2xf32>
    %c128_7 = arith.constant 128 : index
    %c0_8 = arith.constant 0 : index
    %8 = vector.load %arg2[%c128_7, %c0_8] : memref<320x1xf32, #tpu.memory_space<vmem>>, vector<128x1xf32>
    %9 = vector.broadcast %8 : vector<128x1xf32> to vector<128x2xf32>
    %10 = arith.addf %7, %9 : vector<128x2xf32>
    %c256 = arith.constant 256 : index
    %c0_9 = arith.constant 0 : index
    %11 = vector.load %arg1[%c256, %c0_9] : memref<320x256xf32, #tpu.memory_space<vmem>>, vector<64x128xf32>
    %cst_10 = arith.constant dense<0.000000e+00> : vector<64x2xf32>
    %12 = tpu.matmul %11, %10, %cst_10 {dimension_numbers = #tpu.dot_dimension_numbers<[1], [0], [0], [1], [0, 0, 1, 1], [], []>} : vector<64x128xf32>, vector<128x2xf32>, vector<64x2xf32> -> vector<64x2xf32>
    %c256_11 = arith.constant 256 : index
    %c0_12 = arith.constant 0 : index
    %13 = vector.load %arg2[%c256_11, %c0_12] : memref<320x1xf32, #tpu.memory_space<vmem>>, vector<64x1xf32>
    %14 = vector.broadcast %13 : vector<64x1xf32> to vector<64x2xf32>
    %15 = arith.addf %12, %14 : vector<64x2xf32>
    %c0_13 = arith.constant 0 : index
    %c0_14 = arith.constant 0 : index
    %16 = vector.load %arg3[%c0_13, %c0_14] : memref<64x2xf32, #tpu.memory_space<vmem>>, vector<64x2xf32>
    tpu.vector_store %arg3[%c0_13, %c0_14], %15 {strides = array<i32>} : memref<64x2xf32, #tpu.memory_space<vmem>>, vector<64x2xf32>,
    return
  }
}

</mosaic_0001>

<bundles_post_ra>
// kernel: fused_forward.1
= control target key start
LH: loop header
LB: loop body
LE: loop exit
PB: predicated region body
PF: predicated region fallthrough
CT: control target
= control target key end

     0   :  { %8 = vsyncpa [#allocation3], 0  ;;  %s1348_s0 = inlined_call_operand.vmem [shape: f32[256,2], index: 0, kind: input, shape index: {}]   ;;  %s1349_s1 = inlined_call_operand.hbm [shape: f32[320,256], index: 1, kind: input, shape index: {}]   ;;  %s1350_s2 = inlined_call_operand.hbm [shape: f32[320,1], index: 2, kind: input, shape index: {}]   ;;  %s1351_s3 = inlined_call_operand.vmem [shape: f32[64,2], index: 3, kind: output, shape index: {}]  }
   0x1   :  { %9 = vsyncpa [#allocation5], 0  ;;  %s1169_s12 = smov [#allocation2]   ;;  %s1121_s16 = scalar_lea.hbm %s1349_s1, 10240 }
   0x2   :  { %s17_s13 = sshll.u32 %s1169_s12, 4  ;;  %p1122_p0 = scmp.ne.s32.totalorder %s1349_s1, %s1121_s16  ;;  %s18_s13 = int_to_ptr.vmem [resolvable:$true] %s17_s13 }
   0x3   :  { %p1125_p1 = scmp.lt.u32.totalorder %s1121_s16, %s1349_s1 }
   0x5   :  { %p1127_p2 = pnand %p1125_p1, %p1122_p0 }
   0x7   :  { %1130 = shalt.err (!%p1127_p2)
}
   0x8   :  { %s1131_s21 = scalar_lea.vmem %s18_s13, 10240  ;;  %p1136_p4 = scmp.lt.s32.totalorder %s18_s13, %s18_s13 }
   0x9   :  { %p1132_p3 = scmp.ne.s32.totalorder %s18_s13, %s1131_s21  ;;  %p1137_p5 = scmp.lt.s32.totalorder %s1131_s21, %s1131_s21 }
   0xb   :  { %p1138_p6 = por %p1137_p5, %p1136_p4 }
   0xd   :  { %p1139_p7 = pnand %p1138_p6, %p1132_p3 }
   0xf   :  { %1142 = shalt.err (!%p1139_p7)
}
  0x10   :  { %s1170_s22 = smov 256   ;;  %s1171_s23 = smov 16  }
  0x11   :  { %23 = dma.hbm_to_vmem [thread:$0]  %s1349_s1, 10240, %s18_s13, [#allocation3], %s1170_s22, %s1170_s22, %s1171_s23  }
  0x12   :  { %s1172_s26 = smov [#allocation4]   ;;  %s1143_s30 = scalar_lea.hbm %s1350_s2, 5120 }
  0x13   :  { %s29_s27 = sshll.u32 %s1172_s26, 4  ;;  %p1144_p8 = scmp.ne.s32.totalorder %s1350_s2, %s1143_s30  ;;  %s30_s27 = int_to_ptr.vmem [resolvable:$true] %s29_s27 }
  0x14   :  { %p1147_p9 = scmp.lt.u32.totalorder %s1143_s30, %s1350_s2 }
  0x16   :  { %p1149_p10 = pnand %p1147_p9, %p1144_p8 }
  0x18   :  { %1152 = shalt.err (!%p1149_p10)
}
  0x19   :  { %s1153_s8 = scalar_lea.vmem %s30_s27, 5120  ;;  %p1158_p12 = scmp.lt.s32.totalorder %s30_s27, %s30_s27 }
  0x1a   :  { %p1154_p11 = scmp.ne.s32.totalorder %s30_s27, %s1153_s8  ;;  %p1159_p13 = scmp.lt.s32.totalorder %s1153_s8, %s1153_s8 }
  0x1c   :  { %p1160_p0 = por %p1159_p13, %p1158_p12 }
  0x1e   :  { %p1161_p1 = pnand %p1160_p0, %p1154_p11 }
  0x20   :  { %1164 = shalt.err (!%p1161_p1)
}
  0x21   :  { %s1173_s1 = smov 128   ;;  %s1174_s9 = smov 8  }
  0x22   :  { %35 = dma.hbm_to_vmem [thread:$0]  %s1350_s2, 5120, %s30_s27, [#allocation5], %s1173_s1, %s1173_s1, %s1174_s9  }
  0x23   :  { %1165 = dma.done.wait [#allocation3], 10240  }
  0x24   :  { %1166 = vsyncadd [#allocation3], 4294957056 }
  0x25   :  { %1167 = dma.done.wait [#allocation5], 5120  }
  0x26   :  { %1168 = vsyncadd [#allocation5], 4294962176  ;;  %v1175_v0 = vmov 0   ;;  %v58_v1 = vld [vmem:[%s1348_s0 + $0x80] sm:$0xff]  ;;  %v59_v2 = vld [vmem:[%s1348_s0 + $0x88] sm:$0xff]  ;;  %vm765_vm0 = vcmask 15360  }
  0x27   :  { %1119 = vset.pattern.permute.xlu0 %v1175_v0  ;;  %1120 = vset.pattern.permute.xlu1 %v1175_v0  ;;  %v42_v3 = vld [vmem:[%s1348_s0] sm:$0xff]  ;;  %v1016_v4 = vpack.c.bf16 %v59_v2, %v58_v1  ;;  %v43_v5 = vld [vmem:[%s1348_s0 + $0x8] sm:$0xff]  ;;  %v60_v6 = vld [vmem:[%s1348_s0 + $0x90] sm:$0xff] }
  0x28   :  { %v61_v7 = vld [vmem:[%s1348_s0 + $0x98] sm:$0xff]  ;;  %v1018_v8 = vpack.c.bf16 %v43_v5, %v42_v3  ;;  %v44_v10 = vld [vmem:[%s1348_s0 + $0x10] sm:$0xff]  ;;  %v62_v12 = vld [vmem:[%s1348_s0 + $0xa0] sm:$0xff] }
  0x29   :  { %v1020_v9 = vpack.c.bf16 %v61_v7, %v60_v6  ;;  %v45_v11 = vld [vmem:[%s1348_s0 + $0x18] sm:$0xff]  ;;  %1017 = vmatprep.subr.bf16.mxu0 %v1016_v4  ;;  %v63_v13 = vld [vmem:[%s1348_s0 + $0xa8] sm:$0xff]  ;;  %v46_v16 = vld [vmem:[%s1348_s0 + $0x20] sm:$0xff] }
  0x2a   :  { %1019 = vmatpush3.bf16.msra.mxu0 %v1018_v8  ;;  %v1022_v14 = vpack.c.bf16 %v45_v11, %v44_v10  ;;  %v1024_v15 = vpack.c.bf16 %v63_v13, %v62_v12  ;;  %v47_v17 = vld [vmem:[%s1348_s0 + $0x28] sm:$0xff]  ;;  %v64_v18 = vld [vmem:[%s1348_s0 + $0xb0] sm:$0xff]  ;;  %v65_v19 = vld [vmem:[%s1348_s0 + $0xb8] sm:$0xff] }
  0x2b   :  { %1021 = vmatprep.subr.bf16.mxu0 %v1020_v9  ;;  %v1026_v20 = vpack.c.bf16 %v47_v17, %v46_v16  ;;  %v1028_v21 = vpack.c.bf16 %v65_v19, %v64_v18  ;;  %v48_v22 = vld [vmem:[%s1348_s0 + $0x30] sm:$0xff]  ;;  %v49_v23 = vld [vmem:[%s1348_s0 + $0x38] sm:$0xff]  ;;  %v66_v24 = vld [vmem:[%s1348_s0 + $0xc0] sm:$0xff] }
  0x2c   :  { %v67_v25 = vld [vmem:[%s1348_s0 + $0xc8] sm:$0xff]  ;;  %v1030_v27 = vpack.c.bf16 %v49_v23, %v48_v22  ;;  %v50_v29 = vld [vmem:[%s1348_s0 + $0x40] sm:$0xff]  ;;  %v68_v31 = vld [vmem:[%s1348_s0 + $0xd0] sm:$0xff] }
  0x2d   :  { %v75_v26 = vld [vmem:[#allocation2 + $0x8] sm:$0xff]  ;;  %v1032_v28 = vpack.c.bf16 %v67_v25, %v66_v24  ;;  %v69_v32 = vld [vmem:[%s1348_s0 + $0xd8] sm:$0xff]  ;;  %v52_v35 = vld [vmem:[%s1348_s0 + $0x50] sm:$0xff] }
  0x2e   :  { %1023 = vmatpush3.bf16.msra.mxu0 %v1022_v14  ;;  %266 = vmatprep.mubr.f32.mxu0 %v75_v26  ;;  %v51_v30 = vld [vmem:[%s1348_s0 + $0x48] sm:$0xff]  ;;  %v1036_v34 = vpack.c.bf16 %v69_v32, %v68_v31  ;;  %v53_v36 = vld [vmem:[%s1348_s0 + $0x58] sm:$0xff]  ;;  %v106_v37 = vld [vmem:[#allocation4] sm:$0xff] }
  0x2f   :  { %1025 = vmatprep.subr.bf16.mxu0 %v1024_v15  ;;  %v1034_v33 = vpack.c.bf16 %v51_v30, %v50_v29  ;;  %v70_v38 = vld [vmem:[%s1348_s0 + $0xe0] sm:$0xff]  ;;  %v71_v39 = vld [vmem:[%s1348_s0 + $0xe8] sm:$0xff]  ;;  %124 = vperm.xlu0 %1119, %v106_v37   ;;  %v108_v40 = vld [vmem:[#allocation4 + $0x10] sm:$0xff]  ;;  %v1038_v42 = vpack.c.bf16 %v53_v36, %v52_v35 }
  0x30   :  { %134 = vperm.xlu1 %1120, %v108_v40   ;;  %v107_v41 = vld [vmem:[#allocation4 + $0x8] sm:$0xff]  ;;  %v109_v43 = vld [vmem:[#allocation4 + $0x18] sm:$0xff]  ;;  %v1040_v44 = vpack.c.bf16 %v71_v39, %v70_v38  ;;  %v54_v45 = vld [vmem:[%s1348_s0 + $0x60] sm:$0xff] }
  0x31   :  { %v55_v46 = vld [vmem:[%s1348_s0 + $0x68] sm:$0xff]  ;;  %v72_v47 = vld [vmem:[%s1348_s0 + $0xf0] sm:$0xff]  ;;  %v73_v48 = vld [vmem:[%s1348_s0 + $0xf8] sm:$0xff] }
  0x32   :  { %1027 = vmatpush3.bf16.msra.mxu0 %v1026_v20  ;;  %v110_v49 = vld [vmem:[#allocation4 + $0x20] sm:$0xff]  ;;  %v1042_v50 = vpack.c.bf16 %v55_v46, %v54_v45  ;;  %v111_v51 = vld [vmem:[#allocation4 + $0x28] sm:$0xff]  ;;  %v1044_v52 = vpack.c.bf16 %v73_v48, %v72_v47  ;;  %v56_v53 = vld [vmem:[%s1348_s0 + $0x70] sm:$0xff] }
  0x33   :  { %1029 = vmatprep.subr.bf16.mxu0 %v1028_v21  ;;  %129 = vperm.xlu0 %1119, %v107_v41   ;;  %v57_v54 = vld [vmem:[%s1348_s0 + $0x78] sm:$0xff]  ;;  %v112_v55 = vld [vmem:[#allocation4 + $0x30] sm:$0xff]  ;;  %v114_v58 = vld [vmem:[#allocation4 + $0x40] sm:$0xff] }
  0x34   :  { %139 = vperm.xlu1 %1120, %v109_v43   ;;  %v1046_v56 = vpack.c.bf16 %v57_v54, %v56_v53  ;;  %v113_v57 = vld [vmem:[#allocation4 + $0x38] sm:$0xff]  ;;  %v74_v59 = vld [vmem:[#allocation2] sm:$0xff]  ;;  %v115_v60 = vld [vmem:[#allocation4 + $0x48] sm:$0xff] }
  0x35   :  { %v77_v61 = vld [vmem:[#allocation2 + $0x18] sm:$0xff]  ;;  %v116_v62 = vld [vmem:[#allocation4 + $0x50] sm:$0xff]  ;;  %v79_v1 = vld [vmem:[#allocation2 + $0x28] sm:$0xff] }
  0x36   :  { %1031 = vmatpush3.bf16.msra.mxu0 %v1030_v27  ;;  %v76_v63 = vld [vmem:[#allocation2 + $0x10] sm:$0xff]  ;;  %v117_v0 = vld [vmem:[#allocation4 + $0x58] sm:$0xff]  ;;  %v118_v2 = vld [vmem:[#allocation4 + $0x60] sm:$0xff] }
  0x37   :  { %1033 = vmatprep.subr.bf16.mxu0 %v1032_v28  ;;  %144 = vperm.xlu0 %1119, %v110_v49   ;;  %v78_v3 = vld [vmem:[#allocation2 + $0x20] sm:$0xff]  ;;  %v119_v4 = vld [vmem:[#allocation4 + $0x68] sm:$0xff]  ;;  %v81_v5 = vld [vmem:[#allocation2 + $0x38] sm:$0xff] }
  0x38   :  { %149 = vperm.xlu1 %1120, %v111_v51   ;;  %v120_v6 = vld [vmem:[#allocation4 + $0x70] sm:$0xff]  ;;  %v121_v8 = vld [vmem:[#allocation4 + $0x78] sm:$0xff]  ;;  %v83_v9 = vld [vmem:[#allocation2 + $0x48] sm:$0xff] }
  0x39   :  { %v80_v7 = vld [vmem:[#allocation2 + $0x30] sm:$0xff]  ;;  %v363_v10 = vld [vmem:[#allocation4 + $0x80] sm:$0xff]  ;;  %v364_v12 = vld [vmem:[#allocation4 + $0x88] sm:$0xff] }
  0x3a   :  { %1035 = vmatpush3.bf16.msra.mxu0 %v1034_v33  ;;  %v82_v11 = vld [vmem:[#allocation2 + $0x40] sm:$0xff]  ;;  %v85_v13 = vld [vmem:[#allocation2 + $0x58] sm:$0xff]  ;;  %v365_v14 = vld [vmem:[#allocation4 + $0x90] sm:$0xff] }
  0x3b   :  { %1037 = vmatprep.subr.bf16.mxu0 %v1036_v34  ;;  %154 = vperm.xlu0 %1119, %v112_v55   ;;  %v84_v15 = vld [vmem:[#allocation2 + $0x50] sm:$0xff]  ;;  %v366_v16 = vld [vmem:[#allocation4 + $0x98] sm:$0xff]  ;;  %v87_v17 = vld [vmem:[#allocation2 + $0x68] sm:$0xff] }
  0x3c   :  { %159 = vperm.xlu1 %1120, %v113_v57   ;;  %v367_v18 = vld [vmem:[#allocation4 + $0xa0] sm:$0xff]  ;;  %v368_v20 = vld [vmem:[#allocation4 + $0xa8] sm:$0xff]  ;;  %v89_v21 = vld [vmem:[#allocation2 + $0x78] sm:$0xff] }
  0x3d   :  { %v86_v19 = vld [vmem:[#allocation2 + $0x60] sm:$0xff]  ;;  %v369_v22 = vld [vmem:[#allocation4 + $0xb0] sm:$0xff]  ;;  %v370_v24 = vld [vmem:[#allocation4 + $0xb8] sm:$0xff] }
  0x3e   :  { %1039 = vmatpush3.bf16.msra.mxu0 %v1038_v42  ;;  %v88_v23 = vld [vmem:[#allocation2 + $0x70] sm:$0xff]  ;;  %v91_v25 = vld [vmem:[#allocation2 + $0x88] sm:$0xff]  ;;  %v371_v26 = vld [vmem:[#allocation4 + $0xc0] sm:$0xff] }
  0x3f   :  { %1041 = vmatprep.subr.bf16.mxu0 %v1040_v44  ;;  %164 = vperm.xlu0 %1119, %v114_v58   ;;  %v90_v27 = vld [vmem:[#allocation2 + $0x80] sm:$0xff]  ;;  %v372_v28 = vld [vmem:[#allocation4 + $0xc8] sm:$0xff]  ;;  %v93_v29 = vld [vmem:[#allocation2 + $0x98] sm:$0xff] }
  0x40   :  { %169 = vperm.xlu1 %1120, %v115_v60   ;;  %v373_v30 = vld [vmem:[#allocation4 + $0xd0] sm:$0xff]  ;;  %v374_v32 = vld [vmem:[#allocation4 + $0xd8] sm:$0xff]  ;;  %v95_v33 = vld [vmem:[#allocation2 + $0xa8] sm:$0xff] }
  0x41   :  { %v92_v31 = vld [vmem:[#allocation2 + $0x90] sm:$0xff]  ;;  %v375_v34 = vld [vmem:[#allocation4 + $0xe0] sm:$0xff]  ;;  %v376_v36 = vld [vmem:[#allocation4 + $0xe8] sm:$0xff] }
  0x42   :  { %1043 = vmatpush3.bf16.msra.mxu0 %v1042_v50  ;;  %v94_v35 = vld [vmem:[#allocation2 + $0xa0] sm:$0xff]  ;;  %v97_v37 = vld [vmem:[#allocation2 + $0xb8] sm:$0xff]  ;;  %v377_v38 = vld [vmem:[#allocation4 + $0xf0] sm:$0xff] }
  0x43   :  { %1045 = vmatprep.subr.bf16.mxu0 %v1044_v52  ;;  %174 = vperm.xlu0 %1119, %v116_v62   ;;  %v96_v39 = vld [vmem:[#allocation2 + $0xb0] sm:$0xff]  ;;  %v378_v40 = vld [vmem:[#allocation4 + $0xf8] sm:$0xff]  ;;  %v99_v41 = vld [vmem:[#allocation2 + $0xc8] sm:$0xff] }
  0x44   :  { %179 = vperm.xlu1 %1120, %v117_v0   ;;  %v612_v42 = vld [vmem:[#allocation4 + $0x100] sm:$0xff]  ;;  %v613_v44 = vld [vmem:[#allocation4 + $0x108] sm:$0xff]  ;;  %v101_v45 = vld [vmem:[#allocation2 + $0xd8] sm:$0xff] }
  0x45   :  { %v98_v43 = vld [vmem:[#allocation2 + $0xc0] sm:$0xff]  ;;  %v614_v46 = vld [vmem:[#allocation4 + $0x110] sm:$0xff]  ;;  %v615_v48 = vld [vmem:[#allocation4 + $0x118] sm:$0xff] }
  0x46   :  { %1047 = vmatpush3.bf16.msra.mxu0 %v1046_v56  ;;  %v100_v47 = vld [vmem:[#allocation2 + $0xd0] sm:$0xff]  ;;  %v103_v49 = vld [vmem:[#allocation2 + $0xe8] sm:$0xff]  ;;  %v616_v50 = vld [vmem:[#allocation4 + $0x120] sm:$0xff] }
  0x47   :  { %184 = vperm.xlu0 %1119, %v118_v2   ;;  %v102_v51 = vld [vmem:[#allocation2 + $0xe0] sm:$0xff]  ;;  %v617_v52 = vld [vmem:[#allocation4 + $0x128] sm:$0xff]  ;;  %v105_v53 = vld [vmem:[#allocation2 + $0xf8] sm:$0xff] }
  0x48   :  { %189 = vperm.xlu1 %1120, %v119_v4   ;;  %v618_v54 = vld [vmem:[#allocation4 + $0x130] sm:$0xff]  ;;  %v619_v56 = vld [vmem:[#allocation4 + $0x138] sm:$0xff]  ;;  %v347_v57 = vld [vmem:[#allocation2 + $0x100] sm:$0xff] }
  0x49   :  { %267 = vmatmul.mubr.f32.vlgmr.msra.gmra.mrb[0].mxu0 %v74_v59  ;;  %v104_v55 = vld [vmem:[#allocation2 + $0xf0] sm:$0xff]  ;;  %948 = vmatprep.mubr.f32.mxu1 %v347_v57 }
  0x4a   :  { %271 = vmatprep.mubr.f32.mxu0 %v77_v61 }
  0x4b   :  { %194 = vperm.xlu0 %1119, %v120_v6  }
  0x4c   :  { %199 = vperm.xlu1 %1120, %v121_v8  }
  0x4d   :  { %272 = vmatmul.mubr.f32.gmra.mrb[2].mxu0 %v76_v63 }
  0x4e   :  { %276 = vmatprep.mubr.f32.mxu0 %v79_v1 }
  0x4f   :  { %381 = vperm.xlu0 %1119, %v363_v10  }
  0x50   :  { %386 = vperm.xlu1 %1120, %v364_v12  }
  0x51   :  { %277 = vmatmul.mubr.f32.gmra.mrb[4].mxu0 %v78_v3 }
  0x52   :  { %281 = vmatprep.mubr.f32.mxu0 %v81_v5 }
  0x53   :  { %391 = vperm.xlu0 %1119, %v365_v14  }
  0x54   :  { %396 = vperm.xlu1 %1120, %v366_v16  }
  0x55   :  { %282 = vmatmul.mubr.f32.gmra.mrb[6].mxu0 %v80_v7 }
  0x56   :  { %286 = vmatprep.mubr.f32.mxu0 %v83_v9 }
  0x57   :  { %401 = vperm.xlu0 %1119, %v367_v18  }
  0x58   :  { %406 = vperm.xlu1 %1120, %v368_v20  }
  0x59   :  { %287 = vmatmul.mubr.f32.gmra.mrb[8].mxu0 %v82_v11 }
  0x5a   :  { %291 = vmatprep.mubr.f32.mxu0 %v85_v13 }
  0x5b   :  { %411 = vperm.xlu0 %1119, %v369_v22  }
  0x5c   :  { %416 = vperm.xlu1 %1120, %v370_v24  }
  0x5d   :  { %292 = vmatmul.mubr.f32.gmra.mrb[10].mxu0 %v84_v15 }
  0x5e   :  { %296 = vmatprep.mubr.f32.mxu0 %v87_v17 }
  0x5f   :  { %421 = vperm.xlu0 %1119, %v371_v26  }
  0x60   :  { %426 = vperm.xlu1 %1120, %v372_v28  }
  0x61   :  { %297 = vmatmul.mubr.f32.gmra.mrb[12].mxu0 %v86_v19 }
  0x62   :  { %301 = vmatprep.mubr.f32.mxu0 %v89_v21 }
  0x63   :  { %431 = vperm.xlu0 %1119, %v373_v30  }
  0x64   :  { %436 = vperm.xlu1 %1120, %v374_v32  }
  0x65   :  { %302 = vmatmul.mubr.f32.gmra.mrb[14].mxu0 %v88_v23 }
  0x66   :  { %306 = vmatprep.mubr.f32.mxu0 %v91_v25 }
  0x67   :  { %441 = vperm.xlu0 %1119, %v375_v34  }
  0x68   :  { %446 = vperm.xlu1 %1120, %v376_v36  }
  0x69   :  { %307 = vmatmul.mubr.f32.gmra.mrb[16].mxu0 %v90_v27 }
  0x6a   :  { %311 = vmatprep.mubr.f32.mxu0 %v93_v29 }
  0x6b   :  { %451 = vperm.xlu0 %1119, %v377_v38  }
  0x6c   :  { %456 = vperm.xlu1 %1120, %v378_v40  }
  0x6d   :  { %312 = vmatmul.mubr.f32.gmra.mrb[18].mxu0 %v92_v31 }
  0x6e   :  { %316 = vmatprep.mubr.f32.mxu0 %v95_v33 }
  0x6f   :  { %622 = vperm.xlu0 %1119, %v612_v42  }
  0x70   :  { %627 = vperm.xlu1 %1120, %v613_v44  }
  0x71   :  { %317 = vmatmul.mubr.f32.gmra.mrb[20].mxu0 %v94_v35 }
  0x72   :  { %321 = vmatprep.mubr.f32.mxu0 %v97_v37 }
  0x73   :  { %632 = vperm.xlu0 %1119, %v614_v46  }
  0x74   :  { %637 = vperm.xlu1 %1120, %v615_v48  }
  0x75   :  { %322 = vmatmul.mubr.f32.gmra.mrb[22].mxu0 %v96_v39 }
  0x76   :  { %326 = vmatprep.mubr.f32.mxu0 %v99_v41 }
  0x77   :  { %642 = vperm.xlu0 %1119, %v616_v50  }
  0x78   :  { %647 = vperm.xlu1 %1120, %v617_v52  }
  0x79   :  { %327 = vmatmul.mubr.f32.gmra.mrb[24].mxu0 %v98_v43 }
  0x7a   :  { %331 = vmatprep.mubr.f32.mxu0 %v101_v45 }
  0x7b   :  { %652 = vperm.xlu0 %1119, %v618_v54  }
  0x7c   :  { %657 = vperm.xlu1 %1120, %v619_v56  }
  0x7d   :  { %332 = vmatmul.mubr.f32.gmra.mrb[26].mxu0 %v100_v47 }
  0x7e   :  { %336 = vmatprep.mubr.f32.mxu0 %v103_v49 }
  0x81   :  { %337 = vmatmul.mubr.f32.gmra.mrb[28].mxu0 %v102_v51 }
  0x82   :  { %341 = vmatprep.mubr.f32.mxu0 %v105_v53 }
  0x85   :  { %342 = vmatmul.mubr.f32.gmra.mrb[30].mxu0 %v104_v55 }
  0xae   :  { %v125_v59 = vpop.permute.xlu0 %124 }
  0xaf   :  { %v135_v5 = vpop.permute.xlu1 %134 }
  0xb2   :  { %v130_v1 = vpop.permute.xlu0 %129 }
  0xb3   :  { %v140_v12 = vpop.permute.xlu1 %139 }
  0xb6   :  { %v145_v22 = vpop.permute.xlu0 %144 }
  0xb7   :  { %v150_v23 = vpop.permute.xlu1 %149 }
  0xba   :  { %v155_v33 = vpop.permute.xlu0 %154 }
  0xbb   :  { %v160_v34 = vpop.permute.xlu1 %159 }
  0xbe   :  { %v165_v44 = vpop.permute.xlu0 %164 }
  0xbf   :  { %v170_v45 = vpop.permute.xlu1 %169 }
  0xc2   :  { %v175_v55 = vpop.permute.xlu0 %174 }
  0xc3   :  { %v180_v56 = vpop.permute.xlu1 %179 }
 0x11c   :  { %v812_v58 = vpop.f32.mrb[0].mxu0 }
 0x11d   :  { %v813_v60 = vpop.f32.mrb[1].mxu0 }
 0x11e   :  { %v814_v61 = vadd.f32 %v813_v60, %v812_v58 }
 0x120   :  { %v815_v62 = vpop.f32.mrb[2].mxu0  ;;  %v269_v2 = vadd.f32 %v814_v61, %v125_v59 }
 0x121   :  { %v816_v63 = vpop.f32.mrb[3].mxu0 }
 0x122   :  { %v817_v0 = vadd.f32 %v816_v63, %v815_v62 }
 0x124   :  { %v274_v3 = vadd.f32 %v817_v0, %v130_v1  ;;  %v818_v4 = vpop.f32.mrb[4].mxu0 }
 0x125   :  { %v819_v6 = vpop.f32.mrb[5].mxu0 }
 0x126   :  { %v820_v7 = vadd.f32 %v819_v6, %v818_v4  ;;  %v1048_v8 = vpack.c.bf16 %v274_v3, %v269_v2  ;;  %v185_v2 = vpop.permute.xlu0 %184  ;;  %v190_v3 = vpop.permute.xlu1 %189 }
 0x128   :  { %v821_v9 = vpop.f32.mrb[6].mxu0  ;;  %1049 = vmatprep.subr.bf16.mxu1 %v1048_v8  ;;  %v279_v13 = vadd.f32 %v820_v7, %v135_v5 }
 0x129   :  { %v822_v10 = vpop.f32.mrb[7].mxu0  ;;  %1051 = vmatpush3.bf16.msra.mxu1 %v1048_v8 }
 0x12a   :  { %v823_v11 = vadd.f32 %v822_v10, %v821_v9 }
 0x12c   :  { %v284_v14 = vadd.f32 %v823_v11, %v140_v12  ;;  %v824_v15 = vpop.f32.mrb[8].mxu0 }
 0x12d   :  { %v825_v16 = vpop.f32.mrb[9].mxu0 }
 0x12e   :  { %v826_v17 = vadd.f32 %v825_v16, %v824_v15  ;;  %v1052_v18 = vpack.c.bf16 %v284_v14, %v279_v13  ;;  %v195_v13 = vpop.permute.xlu0 %194  ;;  %v200_v14 = vpop.permute.xlu1 %199 }
 0x130   :  { %v827_v19 = vpop.f32.mrb[10].mxu0  ;;  %1053 = vmatprep.subr.bf16.mxu1 %v1052_v18  ;;  %v289_v24 = vadd.f32 %v826_v17, %v145_v22  ;;  %v352_v22 = vld [vmem:[#allocation2 + $0x150] sm:$0xff] }
 0x131   :  { %v828_v20 = vpop.f32.mrb[11].mxu0  ;;  %1055 = vmatpush3.bf16.msra.mxu1 %v1052_v18  ;;  %v348_v18 = vld [vmem:[#allocation2 + $0x110] sm:$0xff] }
 0x132   :  { %v829_v21 = vadd.f32 %v828_v20, %v827_v19  ;;  %v349_v19 = vld [vmem:[#allocation2 + $0x120] sm:$0xff]  ;;  %v350_v20 = vld [vmem:[#allocation2 + $0x130] sm:$0xff] }
 0x134   :  { %v294_v25 = vadd.f32 %v829_v21, %v150_v23  ;;  %v830_v26 = vpop.f32.mrb[12].mxu0  ;;  %v351_v21 = vld [vmem:[#allocation2 + $0x140] sm:$0xff] }
 0x135   :  { %v831_v27 = vpop.f32.mrb[13].mxu0  ;;  %v353_v23 = vld [vmem:[#allocation2 + $0x160] sm:$0xff] }
 0x136   :  { %v832_v28 = vadd.f32 %v831_v27, %v830_v26  ;;  %v1056_v29 = vpack.c.bf16 %v294_v25, %v289_v24  ;;  %v354_v24 = vld [vmem:[#allocation2 + $0x170] sm:$0xff]  ;;  %v355_v25 = vld [vmem:[#allocation2 + $0x180] sm:$0xff] }
 0x137   :  { %v356_v26 = vld [vmem:[#allocation2 + $0x190] sm:$0xff]  ;;  %v357_v27 = vld [vmem:[#allocation2 + $0x1a0] sm:$0xff] }
 0x138   :  { %v833_v30 = vpop.f32.mrb[14].mxu0  ;;  %1057 = vmatprep.subr.bf16.mxu1 %v1056_v29  ;;  %v299_v35 = vadd.f32 %v832_v28, %v155_v33  ;;  %v358_v28 = vld [vmem:[#allocation2 + $0x1b0] sm:$0xff]  ;;  %v604_v33 = vld [vmem:[#allocation2 + $0x200] sm:$0xff] }
 0x139   :  { %v834_v31 = vpop.f32.mrb[15].mxu0  ;;  %1059 = vmatpush3.bf16.msra.mxu1 %v1056_v29  ;;  %v359_v29 = vld [vmem:[#allocation2 + $0x1c0] sm:$0xff] }
 0x13a   :  { %v835_v32 = vadd.f32 %v834_v31, %v833_v30  ;;  %v360_v30 = vld [vmem:[#allocation2 + $0x1d0] sm:$0xff]  ;;  %v361_v31 = vld [vmem:[#allocation2 + $0x1e0] sm:$0xff] }
 0x13c   :  { %v304_v36 = vadd.f32 %v835_v32, %v160_v34  ;;  %v836_v37 = vpop.f32.mrb[16].mxu0  ;;  %v362_v32 = vld [vmem:[#allocation2 + $0x1f0] sm:$0xff]  ;;  %v387_v34 = vpop.permute.xlu1 %386 }
 0x13d   :  { %v837_v38 = vpop.f32.mrb[17].mxu0 }
 0x13e   :  { %v838_v39 = vadd.f32 %v837_v38, %v836_v37  ;;  %v1060_v40 = vpack.c.bf16 %v304_v36, %v299_v35  ;;  %v382_v35 = vpop.permute.xlu0 %381 }
 0x140   :  { %v839_v41 = vpop.f32.mrb[18].mxu0  ;;  %1061 = vmatprep.subr.bf16.mxu1 %v1060_v40  ;;  %v309_v46 = vadd.f32 %v838_v39, %v165_v44  ;;  %v397_v36 = vpop.permute.xlu1 %396 }
 0x141   :  { %v840_v42 = vpop.f32.mrb[19].mxu0  ;;  %1063 = vmatpush3.bf16.msra.mxu1 %v1060_v40 }
 0x142   :  { %v841_v43 = vadd.f32 %v840_v42, %v839_v41  ;;  %v392_v37 = vpop.permute.xlu0 %391 }
 0x144   :  { %v314_v47 = vadd.f32 %v841_v43, %v170_v45  ;;  %v842_v48 = vpop.f32.mrb[20].mxu0  ;;  %v407_v38 = vpop.permute.xlu1 %406 }
 0x145   :  { %v843_v49 = vpop.f32.mrb[21].mxu0 }
 0x146   :  { %v844_v50 = vadd.f32 %v843_v49, %v842_v48  ;;  %v1064_v51 = vpack.c.bf16 %v314_v47, %v309_v46  ;;  %v402_v39 = vpop.permute.xlu0 %401 }
 0x148   :  { %v845_v52 = vpop.f32.mrb[22].mxu0  ;;  %1065 = vmatprep.subr.bf16.mxu1 %v1064_v51  ;;  %v319_v57 = vadd.f32 %v844_v50, %v175_v55  ;;  %v417_v44 = vpop.permute.xlu1 %416 }
 0x149   :  { %v846_v53 = vpop.f32.mrb[23].mxu0  ;;  %1067 = vmatpush3.bf16.msra.mxu1 %v1064_v51 }
 0x14a   :  { %v847_v54 = vadd.f32 %v846_v53, %v845_v52  ;;  %v412_v47 = vpop.permute.xlu0 %411 }
 0x14c   :  { %v324_v58 = vadd.f32 %v847_v54, %v180_v56  ;;  %v848_v59 = vpop.f32.mrb[24].mxu0  ;;  %v427_v55 = vpop.permute.xlu1 %426 }
 0x14d   :  { %v849_v60 = vpop.f32.mrb[25].mxu0 }
 0x14e   :  { %v850_v61 = vadd.f32 %v849_v60, %v848_v59  ;;  %v1068_v62 = vpack.c.bf16 %v324_v58, %v319_v57  ;;  %v422_v57 = vpop.permute.xlu0 %421 }
 0x150   :  { %v851_v63 = vpop.f32.mrb[26].mxu0  ;;  %1069 = vmatprep.subr.bf16.mxu1 %v1068_v62  ;;  %v329_v4 = vadd.f32 %v850_v61, %v185_v2 }
 0x151   :  { %v852_v0 = vpop.f32.mrb[27].mxu0  ;;  %1071 = vmatpush3.bf16.msra.mxu1 %v1068_v62 }
 0x152   :  { %v853_v1 = vadd.f32 %v852_v0, %v851_v63  ;;  %v437_v63 = vpop.permute.xlu1 %436  ;;  %v432_v2 = vpop.permute.xlu0 %431 }
 0x154   :  { %v334_v5 = vadd.f32 %v853_v1, %v190_v3  ;;  %v854_v6 = vpop.f32.mrb[28].mxu0 }
 0x155   :  { %v855_v7 = vpop.f32.mrb[29].mxu0 }
 0x156   :  { %v856_v8 = vadd.f32 %v855_v7, %v854_v6  ;;  %v1072_v9 = vpack.c.bf16 %v334_v5, %v329_v4 }
 0x158   :  { %v857_v10 = vpop.f32.mrb[30].mxu0  ;;  %1073 = vmatprep.subr.bf16.mxu1 %v1072_v9  ;;  %v339_v15 = vadd.f32 %v856_v8, %v195_v13 }
 0x159   :  { %v858_v11 = vpop.f32.mrb[31].mxu0  ;;  %1075 = vmatpush3.bf16.msra.mxu1 %v1072_v9 }
 0x15a   :  { %v859_v12 = vadd.f32 %v858_v11, %v857_v10  ;;  %v447_v10 = vpop.permute.xlu1 %446 }
 0x15c   :  { %v344_v16 = vadd.f32 %v859_v12, %v200_v14  ;;  %v442_v12 = vpop.permute.xlu0 %441 }
 0x15e   :  { %v1076_v17 = vpack.c.bf16 %v344_v16, %v339_v15 }
 0x160   :  { %1077 = vmatprep.subr.bf16.mxu1 %v1076_v17 }
 0x161   :  { %1079 = vmatpush3.bf16.msra.mxu1 %v1076_v17 }
 0x164   :  { %949 = vmatmul.mubr.f32.vlgmr.msra.gmra.mrb[0].mxu1 %v348_v18  ;;  %v457_v18 = vpop.permute.xlu1 %456 }
 0x165   :  { %951 = vmatprep.mubr.f32.mxu1 %v349_v19 }
 0x168   :  { %952 = vmatmul.mubr.f32.gmra.mrb[2].mxu1 %v350_v20 }
 0x169   :  { %954 = vmatprep.mubr.f32.mxu1 %v351_v21  ;;  %v452_v21 = vpop.permute.xlu0 %451 }
 0x16c   :  { %955 = vmatmul.mubr.f32.gmra.mrb[4].mxu1 %v352_v22 }
 0x16d   :  { %957 = vmatprep.mubr.f32.mxu1 %v353_v23 }
 0x170   :  { %958 = vmatmul.mubr.f32.gmra.mrb[6].mxu1 %v354_v24 }
 0x171   :  { %960 = vmatprep.mubr.f32.mxu1 %v355_v25 }
 0x174   :  { %961 = vmatmul.mubr.f32.gmra.mrb[8].mxu1 %v356_v26  ;;  %v605_v26 = vld [vmem:[#allocation2 + $0x210] sm:$0xff] }
 0x175   :  { %963 = vmatprep.mubr.f32.mxu1 %v357_v27  ;;  %v606_v27 = vld [vmem:[#allocation2 + $0x220] sm:$0xff] }
 0x178   :  { %964 = vmatmul.mubr.f32.gmra.mrb[10].mxu1 %v358_v28  ;;  %v607_v28 = vld [vmem:[#allocation2 + $0x230] sm:$0xff] }
 0x179   :  { %966 = vmatprep.mubr.f32.mxu1 %v359_v29  ;;  %v608_v29 = vld [vmem:[#allocation2 + $0x240] sm:$0xff] }
 0x17c   :  { %967 = vmatmul.mubr.f32.gmra.mrb[12].mxu1 %v360_v30  ;;  %v609_v30 = vld [vmem:[#allocation2 + $0x250] sm:$0xff] }
 0x17d   :  { %969 = vmatprep.mubr.f32.mxu1 %v361_v31  ;;  %v610_v31 = vld [vmem:[#allocation2 + $0x260] sm:$0xff] }
 0x180   :  { %970 = vmatmul.mubr.f32.gmra.mrb[14].mxu1 %v362_v32  ;;  %v611_v32 = vld [vmem:[#allocation2 + $0x270] sm:$0xff] }
 0x181   :  { %1004 = vmatprep.mubr.f32.mxu1 %v604_v33  ;;  %v628_v33 = vpop.permute.xlu1 %627 }
 0x237   :  { %v950_v40 = vpop.f32.mrb[0].mxu1 }
 0x238   :  { %v531_v41 = vadd.f32 %v950_v40, %v387_v34  ;;  %v525_v42 = vpop.f32.mrb[1].mxu1  ;;  %v623_v34 = vpop.permute.xlu0 %622 }
 0x239   :  { %v526_v43 = vadd.f32 %v525_v42, %v382_v35  ;;  %v638_v35 = vpop.permute.xlu1 %637 }
 0x23b   :  { %v1080_v45 = vpack.c.bf16 %v531_v41, %v526_v43  ;;  %v953_v46 = vpop.f32.mrb[2].mxu1 }
 0x23c   :  { %v541_v48 = vadd.f32 %v953_v46, %v397_v36  ;;  %v535_v49 = vpop.f32.mrb[3].mxu1 }
 0x23d   :  { %v536_v50 = vadd.f32 %v535_v49, %v392_v37  ;;  %1081 = vmatprep.subr.bf16.mxu1 %v1080_v45  ;;  %v633_v37 = vpop.permute.xlu0 %632 }
 0x23e   :  { %1083 = vmatpush3.bf16.msra.mxu1 %v1080_v45 }
 0x23f   :  { %v1084_v51 = vpack.c.bf16 %v541_v48, %v536_v50  ;;  %v956_v52 = vpop.f32.mrb[4].mxu1 }
 0x240   :  { %v551_v53 = vadd.f32 %v956_v52, %v407_v38  ;;  %v545_v54 = vpop.f32.mrb[5].mxu1 }
 0x241   :  { %v546_v56 = vadd.f32 %v545_v54, %v402_v39  ;;  %1085 = vmatprep.subr.bf16.mxu1 %v1084_v51  ;;  %v643_v46 = vpop.permute.xlu0 %642 }
 0x242   :  { %1087 = vmatpush3.bf16.msra.mxu1 %v1084_v51 }
 0x243   :  { %v1088_v58 = vpack.c.bf16 %v551_v53, %v546_v56  ;;  %v959_v59 = vpop.f32.mrb[6].mxu1 }
 0x244   :  { %v561_v60 = vadd.f32 %v959_v59, %v417_v44  ;;  %v555_v61 = vpop.f32.mrb[7].mxu1  ;;  %v648_v44 = vpop.permute.xlu1 %647 }
 0x245   :  { %v556_v62 = vadd.f32 %v555_v61, %v412_v47  ;;  %1089 = vmatprep.subr.bf16.mxu1 %v1088_v58  ;;  %v653_v53 = vpop.permute.xlu0 %652 }
 0x246   :  { %1091 = vmatpush3.bf16.msra.mxu1 %v1088_v58 }
 0x247   :  { %v1092_v0 = vpack.c.bf16 %v561_v60, %v556_v62  ;;  %v962_v1 = vpop.f32.mrb[8].mxu1 }
 0x248   :  { %v571_v3 = vadd.f32 %v962_v1, %v427_v55  ;;  %v565_v4 = vpop.f32.mrb[9].mxu1  ;;  %v658_v51 = vpop.permute.xlu1 %657 }
 0x249   :  { %v566_v5 = vadd.f32 %v565_v4, %v422_v57  ;;  %1093 = vmatprep.subr.bf16.mxu1 %v1092_v0 }
 0x24a   :  { %1095 = vmatpush3.bf16.msra.mxu1 %v1092_v0 }
 0x24b   :  { %v1096_v6 = vpack.c.bf16 %v571_v3, %v566_v5  ;;  %v965_v7 = vpop.f32.mrb[10].mxu1 }
 0x24c   :  { %v581_v8 = vadd.f32 %v965_v7, %v437_v63  ;;  %v575_v9 = vpop.f32.mrb[11].mxu1 }
 0x24d   :  { %v576_v11 = vadd.f32 %v575_v9, %v432_v2  ;;  %1097 = vmatprep.subr.bf16.mxu1 %v1096_v6 }
 0x24e   :  { %1099 = vmatpush3.bf16.msra.mxu1 %v1096_v6 }
 0x24f   :  { %v1100_v13 = vpack.c.bf16 %v581_v8, %v576_v11  ;;  %v968_v14 = vpop.f32.mrb[12].mxu1 }
 0x250   :  { %v591_v15 = vadd.f32 %v968_v14, %v447_v10  ;;  %v585_v16 = vpop.f32.mrb[13].mxu1 }
 0x251   :  { %v586_v17 = vadd.f32 %v585_v16, %v442_v12  ;;  %1101 = vmatprep.subr.bf16.mxu1 %v1100_v13 }
 0x252   :  { %1103 = vmatpush3.bf16.msra.mxu1 %v1100_v13 }
 0x253   :  { %v1104_v19 = vpack.c.bf16 %v591_v15, %v586_v17  ;;  %v971_v20 = vpop.f32.mrb[14].mxu1 }
 0x254   :  { %v601_v22 = vadd.f32 %v971_v20, %v457_v18  ;;  %v595_v23 = vpop.f32.mrb[15].mxu1 }
 0x255   :  { %v596_v24 = vadd.f32 %v595_v23, %v452_v21  ;;  %1105 = vmatprep.subr.bf16.mxu1 %v1104_v19 }
 0x256   :  { %1107 = vmatpush3.bf16.msra.mxu1 %v1104_v19 }
 0x257   :  { %v1108_v25 = vpack.c.bf16 %v601_v22, %v596_v24 }
 0x259   :  { %1109 = vmatprep.subr.bf16.mxu1 %v1108_v25 }
 0x25a   :  { %1111 = vmatpush3.bf16.msra.mxu1 %v1108_v25 }
 0x25d   :  { %1005 = vmatmul.mubr.f32.vlgmr.msra.gmra.mrb[16].mxu1 %v605_v26 }
 0x25e   :  { %1007 = vmatprep.mubr.f32.mxu1 %v606_v27 }
 0x261   :  { %1008 = vmatmul.mubr.f32.gmra.mrb[18].mxu1 %v607_v28 }
 0x262   :  { %1010 = vmatprep.mubr.f32.mxu1 %v608_v29 }
 0x265   :  { %1011 = vmatmul.mubr.f32.gmra.mrb[20].mxu1 %v609_v30 }
 0x266   :  { %1013 = vmatprep.mubr.f32.mxu1 %v610_v31 }
 0x269   :  { %1014 = vmatmul.mubr.f32.gmra.mrb[22].mxu1 %v611_v32 }
 0x330   :  { %v1006_v36 = vpop.f32.mrb[16].mxu1 }
 0x331   :  { %v732_v38 = vadd.f32 %v1006_v36, %v628_v33  ;;  %v726_v39 = vpop.f32.mrb[17].mxu1 }
 0x332   :  { %v727_v40 = vadd.f32 %v726_v39, %v623_v34 }
 0x333   :  { %767 = vst.msk [vmem:[%s1351_s3 + $0x8] sm:$0xff] %vm765_vm0, %v732_v38 }
 0x334   :  { %766 = vst.msk [vmem:[%s1351_s3] sm:$0xff] %vm765_vm0, %v727_v40  ;;  %v1009_v41 = vpop.f32.mrb[18].mxu1 }
 0x335   :  { %v742_v42 = vadd.f32 %v1009_v41, %v638_v35  ;;  %v736_v43 = vpop.f32.mrb[19].mxu1 }
 0x336   :  { %v737_v45 = vadd.f32 %v736_v43, %v633_v37 }
 0x337   :  { %769 = vst.msk [vmem:[%s1351_s3 + $0x18] sm:$0xff] %vm765_vm0, %v742_v42 }
 0x338   :  { %768 = vst.msk [vmem:[%s1351_s3 + $0x10] sm:$0xff] %vm765_vm0, %v737_v45  ;;  %v1012_v47 = vpop.f32.mrb[20].mxu1 }
 0x339   :  { %v752_v48 = vadd.f32 %v1012_v47, %v648_v44  ;;  %v746_v49 = vpop.f32.mrb[21].mxu1 }
 0x33a   :  { %v747_v50 = vadd.f32 %v746_v49, %v643_v46 }
 0x33b   :  { %771 = vst.msk [vmem:[%s1351_s3 + $0x28] sm:$0xff] %vm765_vm0, %v752_v48 }
 0x33c   :  { %770 = vst.msk [vmem:[%s1351_s3 + $0x20] sm:$0xff] %vm765_vm0, %v747_v50  ;;  %v1015_v52 = vpop.f32.mrb[22].mxu1 }
 0x33d   :  { %v762_v54 = vadd.f32 %v1015_v52, %v658_v51  ;;  %v756_v55 = vpop.f32.mrb[23].mxu1 }
 0x33e   :  { %v757_v56 = vadd.f32 %v756_v55, %v653_v53 }
 0x33f   :  { %773 = vst.msk [vmem:[%s1351_s3 + $0x38] sm:$0xff] %vm765_vm0, %v762_v54 }
 0x340   :  { %772 = vst.msk [vmem:[%s1351_s3 + $0x30] sm:$0xff] %vm765_vm0, %v757_v56 }
 0x341   :  { %778 = vsyncpa [#allocation3], 1 }
 0x342   :  { %779 = vsyncpa [#allocation5], 1 }

</bundles_post_ra>
